<compile_context>
chip_gen: v7x
topology: tpu7x:2x2x1
jax: 0.10.0
libtpu: 0.0.40
codegen_flags: <defaults>
</compile_context>

<pallas_src>
import jax
import jax.numpy as jnp
import numpy as np
from jax.experimental import pallas as pl
from jax.experimental.pallas import tpu as pltpu  # noqa: F401  (TPU backend extensions)

# ----- small, module-consistent hyper-parameters -----
N        = 2      # batch
T        = 64     # time samples (W in NCHW)
F1       = 8      # temporal filters
T1       = 16     # temporal kernel length
F2       = 8      # filters of the (1,1) "spatial" conv
P1_T     = 8      # pooling kernel (time)
P1_S     = 4      # pooling stride (time)
NCLASSES = 4

L1       = T - T1 + 1                # conv output length (valid conv)        = 49
T_POOL   = (L1 - P1_T) // P1_S + 1   # AvgPool2d output length (floor mode)   = 11
LAST_DIM = F2 * T_POOL               # nn.Flatten feature size ("last_dim")   = 88
EPS_LOG  = 1e-6
EPS_BN   = 1e-5

# ----- padded, lane-dense shapes -----
NPAD  = 8                      # batch rows padded to one sublane group
TPAD  = 128                    # time + constant-1 bias column (65) padded to lane width
HPAD  = 512                    # flattened conv output F2*L1 = 392 padded to lane width
CPAD  = 128                    # flattened pooled width LAST_DIM = 88 (and NCLASSES) padded
NBLK  = HPAD // 128            # conv / pool processed in 128-lane column blocks

# packed parameter slab row offsets (all 128-wide, (8,128)-aligned)
WT_OFF  = 0                    # NBLK x (128,128): Toeplitz conv weight (+ bias row)
PM_OFF  = WT_OFF + NBLK * 128  # NBLK x (128,128): block-diagonal avg-pool matrix
WFC_OFF = PM_OFF + NBLK * 128  # (128,128): classifier weight (flatten order, transposed)
BFC_OFF = WFC_OFF + CPAD       # (8,128):   classifier bias in row 0
NROWS   = BFC_OFF + 8          # = 1160 rows -> ~594 KB, one DMA


# ---------------------------------------------------------------------------
# Fused kernel: Toeplitz conv(+bias+BN) -> square -> pool matmul -> log -> linear
# ---------------------------------------------------------------------------
def _fused_kernel(x_ref, p_ref, out_ref):
    # x_ref:   (NPAD, TPAD)  batch (rows 0..N-1) + constant-1 bias column at T
    # p_ref:   (NROWS, 128)  packed constant parameters (see offsets above)
    # out_ref: (NPAD, CPAD)  padded logits; wrapper slices [:N, :NCLASSES]
    x = x_ref[...]                                              # (8, 128)
    pooled = jnp.zeros((NPAD, CPAD), jnp.float32)
    for i in range(NBLK):                                       # static unroll, 4 blocks
        wt_i = p_ref[WT_OFF + i * 128: WT_OFF + (i + 1) * 128, :]   # (128, 128)
        pm_i = p_ref[PM_OFF + i * 128: PM_OFF + (i + 1) * 128, :]   # (128, 128)
        # conv + 1x1 conv + BatchNorm + bias, whole batch, one MXU tile
        h = jnp.dot(x, wt_i, preferred_element_type=jnp.float32)    # (8, 128)
        # square (VPU) + average pool as matmul (MXU), accumulated across blocks
        pooled = pooled + jnp.dot(h * h, pm_i, preferred_element_type=jnp.float32)
    # log(clamp) once over the whole flat tile (EUP); dropout == identity at inference
    feats = jnp.log(jnp.maximum(pooled, EPS_LOG))                # (8, 128), flatten order (f, j)
    wfc = p_ref[WFC_OFF: WFC_OFF + CPAD, :]                      # (128, 128)
    bfc = p_ref[BFC_OFF: BFC_OFF + 1, :]                         # (1, 128)
    # classifier: single matmul for both samples + bias; single unmasked store
    out_ref[...] = jnp.dot(feats, wfc, preferred_element_type=jnp.float32) + bfc


def shallow_convnet_forward(x, p):
    """x: (N, 1, T) — same layout the PyTorch module receives (pre-unsqueeze)."""
    x2 = x.reshape(N, T).astype(jnp.float32)
    # lane-/sublane-padded input with a constant-1 column that folds the bias
    x_pad = jnp.zeros((NPAD, TPAD), jnp.float32)
    x_pad = x_pad.at[:N, :T].set(x2)
    x_pad = x_pad.at[:, T].set(1.0)

    flops = (2 * NPAD * TPAD * HPAD        # Toeplitz conv matmuls
             + NPAD * HPAD                 # square
             + 2 * NPAD * HPAD * CPAD      # pooling matmuls
             + 2 * NPAD * CPAD * CPAD      # classifier matmul
             + NPAD * CPAD)                # bias add
    bytes_accessed = 4 * (NPAD * TPAD + NROWS * 128 + NPAD * CPAD)

    out_pad = pl.pallas_call(
        _fused_kernel,
        out_shape=jax.ShapeDtypeStruct((NPAD, CPAD), jnp.float32),
        cost_estimate=pl.CostEstimate(
            flops=flops,
            transcendentals=NPAD * CPAD,   # the log()s
            bytes_accessed=bytes_accessed),
    )(x_pad, p["slab"])
    return out_pad[:N, :NCLASSES]


# ---------------------------------------------------------------------------
# Parameter setup / host-side folding & packing
# ---------------------------------------------------------------------------
def renorm(w, maxnorm):
    """torch.renorm(w, p=2, dim=0, maxnorm) — per output-filter L2 clipping."""
    flat = w.reshape(w.shape[0], -1)
    norms = jnp.sqrt(jnp.sum(flat * flat, axis=1, keepdims=True))
    scale = jnp.where(norms > maxnorm, maxnorm / norms, 1.0)
    return (flat * scale).reshape(w.shape)


def _pack_params(weff, beff, wfc, bfc):
    """Build the single (NROWS, 128) constant-parameter slab (numpy, host-side)."""
    # Toeplitz-expanded conv weight: wt[t, f*L1+l] = weff[f, t-l] for 0<=t-l<T1,
    # plus the folded bias in row T (matched by the constant-1 column of x).
    wt = np.zeros((TPAD, HPAD), np.float32)
    for f in range(F2):
        for l in range(L1):
            c = f * L1 + l
            wt[l:l + T1, c] = weff[f, :]
            wt[T, c] = beff[f]
    # block-diagonal average-pooling matrix: flat (f, l) -> flat (f, j)
    pm = np.zeros((HPAD, CPAD), np.float32)
    for f in range(F2):
        for j in range(T_POOL):
            r0 = f * L1 + j * P1_S
            pm[r0:r0 + P1_T, f * T_POOL + j] = 1.0 / P1_T
    # classifier: flatten order (f, j) matches PyTorch nn.Flatten of (N, F2, 1, T_POOL)
    wfc_t = np.zeros((CPAD, CPAD), np.float32)
    wfc_t[:LAST_DIM, :NCLASSES] = wfc.T
    bfc_pad = np.zeros((8, CPAD), np.float32)
    bfc_pad[0, :NCLASSES] = bfc

    slab = np.zeros((NROWS, 128), np.float32)
    for i in range(NBLK):
        slab[WT_OFF + i * 128: WT_OFF + (i + 1) * 128, :] = wt[:, i * 128:(i + 1) * 128]
        slab[PM_OFF + i * 128: PM_OFF + (i + 1) * 128, :] = pm[i * 128:(i + 1) * 128, :]
    slab[WFC_OFF:WFC_OFF + CPAD, :] = wfc_t
    slab[BFC_OFF:BFC_OFF + 8, :] = bfc_pad
    return slab


def init_params(key):
    ks = jax.random.split(key, 9)
    w1 = jax.random.normal(ks[0], (F1, 1, 1, T1), jnp.float32) * 0.3
    b1 = jax.random.normal(ks[1], (F1,), jnp.float32) * 0.1
    w2 = jax.random.normal(ks[2], (F2, F1, 1, 1), jnp.float32) * 0.3
    gamma = 1.0 + 0.1 * jax.random.normal(ks[3], (F2,), jnp.float32)
    beta = 0.1 * jax.random.normal(ks[4], (F2,), jnp.float32)
    rmean = 0.1 * jax.random.normal(ks[5], (F2,), jnp.float32)
    rvar = jnp.abs(1.0 + 0.1 * jax.random.normal(ks[6], (F2,), jnp.float32))
    wfc = jax.random.normal(ks[7], (NCLASSES, LAST_DIM), jnp.float32) * 0.1
    bfc = 0.1 * jax.random.normal(ks[8], (NCLASSES,), jnp.float32)

    # max_norm constraints applied in the PyTorch forward() — applied BEFORE folding.
    # TODO(synk): PyTorch re-applies renorm every forward; equivalent here only
    # because weights are frozen at inference.
    w1 = renorm(w1, 2.0)
    w2 = renorm(w2, 2.0)
    wfc = renorm(wfc, 0.5)

    w1m = w1.reshape(F1, T1)        # (F1, T1)
    w2m = w2.reshape(F2, F1)        # (F2, F1)

    # fold eval-mode BatchNorm into per-channel scale/shift
    bn_scale = gamma / jnp.sqrt(rvar + EPS_BN)        # (F2,)
    bn_shift = beta - rmean * bn_scale                # (F2,)

    # fold conv2 (1x1) + BN into the temporal conv (all linear, exact)
    weff = bn_scale[:, None] * (w2m @ w1m)            # (F2, T1)
    beff = bn_scale * (w2m @ b1) + bn_shift           # (F2,)

    slab = _pack_params(np.asarray(weff), np.asarray(beff),
                        np.asarray(wfc), np.asarray(bfc))

    return dict(
        # originals (for the pure-JAX reference)
        w1=w1m, b1=b1, w2=w2m, bn_scale=bn_scale, bn_shift=bn_shift,
        wfc=wfc, bfc=bfc,
        # single packed constant-parameter slab for the kernel
        slab=jnp.asarray(slab),
    )


# ---------------------------------------------------------------------------
# pure-JAX reference (correctness check only, uses UN-folded parameters)
# ---------------------------------------------------------------------------
def reference_forward(x, p):
    xt = x.reshape(N, T)
    cols = jnp.stack([xt[:, k:k + L1] for k in range(T1)], axis=1)            # (N, T1, L1)
    h1 = jnp.einsum("fk,nkl->nfl", p["w1"], cols) + p["b1"][None, :, None]    # (N, F1, L1)
    h2 = jnp.einsum("gf,nfl->ngl", p["w2"], h1)                               # (N, F2, L1)
    h2 = h2 * p["bn_scale"][None, :, None] + p["bn_shift"][None, :, None]
    h2 = h2 * h2
    pooled = jnp.stack(
        [h2[:, :, j * P1_S: j * P1_S + P1_T].mean(-1) for j in range(T_POOL)], axis=-1
    )                                                                          # (N, F2, T_POOL)
    feats = jnp.log(jnp.maximum(pooled, EPS_LOG)).reshape(N, LAST_DIM)
    return feats @ p["wfc"].T + p["bfc"][None, :]


if __name__ == "__main__":
    key = jax.random.PRNGKey(0)
    kx, kp = jax.random.split(key)
    # module input (before the internal unsqueeze): (N, 1, T)
    x = jax.random.normal(kx, (N, 1, T), jnp.float32)
    params = init_params(kp)

    out = shallow_convnet_forward(x, params)
    out = jax.block_until_ready(out)

    ref = reference_forward(x, params)
    np.testing.assert_allclose(np.asarray(out), np.asarray(ref), rtol=1e-3, atol=1e-3)
    assert out.shape == (N, NCLASSES)
    print("KERNEL_OK")
</pallas_src>

<mosaic_0001>
module attributes {stable_mosaic.version = 11 : i64} {
  func.func @_fused_kernel(%arg0: memref<8x128xf32, #tpu.memory_space<vmem>>, %arg1: memref<1160x128xf32, #tpu.memory_space<vmem>>, %arg2: memref<8x128xf32, #tpu.memory_space<vmem>>) attributes {dimension_semantics = [], scalar_prefetch = 0 : i64, scratch_operands = 0 : i64, tpu.core_type = #tpu.core_type<tc>} {
    %c0 = arith.constant 0 : index
    %c0_0 = arith.constant 0 : index
    %0 = vector.load %arg0[%c0, %c0_0] : memref<8x128xf32, #tpu.memory_space<vmem>>, vector<8x128xf32>
    %cst = arith.constant 0.000000e+00 : f32
    %1 = vector.broadcast %cst : f32 to vector<8x128xf32>
    %c0_1 = arith.constant 0 : index
    %c0_2 = arith.constant 0 : index
    %2 = vector.load %arg1[%c0_1, %c0_2] : memref<1160x128xf32, #tpu.memory_space<vmem>>, vector<128x128xf32>
    %c512 = arith.constant 512 : index
    %c0_3 = arith.constant 0 : index
    %3 = vector.load %arg1[%c512, %c0_3] : memref<1160x128xf32, #tpu.memory_space<vmem>>, vector<128x128xf32>
    %cst_4 = arith.constant dense<0.000000e+00> : vector<8x128xf32>
    %4 = tpu.matmul %0, %2, %cst_4 {dimension_numbers = #tpu.dot_dimension_numbers<[1], [0], [0], [1], [0, 0, 1, 1], [], []>} : vector<8x128xf32>, vector<128x128xf32>, vector<8x128xf32> -> vector<8x128xf32>
    %5 = arith.mulf %4, %4 : vector<8x128xf32>
    %cst_5 = arith.constant dense<0.000000e+00> : vector<8x128xf32>
    %6 = tpu.matmul %5, %3, %cst_5 {dimension_numbers = #tpu.dot_dimension_numbers<[1], [0], [0], [1], [0, 0, 1, 1], [], []>} : vector<8x128xf32>, vector<128x128xf32>, vector<8x128xf32> -> vector<8x128xf32>
    %7 = arith.addf %1, %6 : vector<8x128xf32>
    %c128 = arith.constant 128 : index
    %c0_6 = arith.constant 0 : index
    %8 = vector.load %arg1[%c128, %c0_6] : memref<1160x128xf32, #tpu.memory_space<vmem>>, vector<128x128xf32>
    %c640 = arith.constant 640 : index
    %c0_7 = arith.constant 0 : index
    %9 = vector.load %arg1[%c640, %c0_7] : memref<1160x128xf32, #tpu.memory_space<vmem>>, vector<128x128xf32>
    %cst_8 = arith.constant dense<0.000000e+00> : vector<8x128xf32>
    %10 = tpu.matmul %0, %8, %cst_8 {dimension_numbers = #tpu.dot_dimension_numbers<[1], [0], [0], [1], [0, 0, 1, 1], [], []>} : vector<8x128xf32>, vector<128x128xf32>, vector<8x128xf32> -> vector<8x128xf32>
    %11 = arith.mulf %10, %10 : vector<8x128xf32>
    %cst_9 = arith.constant dense<0.000000e+00> : vector<8x128xf32>
    %12 = tpu.matmul %11, %9, %cst_9 {dimension_numbers = #tpu.dot_dimension_numbers<[1], [0], [0], [1], [0, 0, 1, 1], [], []>} : vector<8x128xf32>, vector<128x128xf32>, vector<8x128xf32> -> vector<8x128xf32>
    %13 = arith.addf %7, %12 : vector<8x128xf32>
    %c256 = arith.constant 256 : index
    %c0_10 = arith.constant 0 : index
    %14 = vector.load %arg1[%c256, %c0_10] : memref<1160x128xf32, #tpu.memory_space<vmem>>, vector<128x128xf32>
    %c768 = arith.constant 768 : index
    %c0_11 = arith.constant 0 : index
    %15 = vector.load %arg1[%c768, %c0_11] : memref<1160x128xf32, #tpu.memory_space<vmem>>, vector<128x128xf32>
    %cst_12 = arith.constant dense<0.000000e+00> : vector<8x128xf32>
    %16 = tpu.matmul %0, %14, %cst_12 {dimension_numbers = #tpu.dot_dimension_numbers<[1], [0], [0], [1], [0, 0, 1, 1], [], []>} : vector<8x128xf32>, vector<128x128xf32>, vector<8x128xf32> -> vector<8x128xf32>
    %17 = arith.mulf %16, %16 : vector<8x128xf32>
    %cst_13 = arith.constant dense<0.000000e+00> : vector<8x128xf32>
    %18 = tpu.matmul %17, %15, %cst_13 {dimension_numbers = #tpu.dot_dimension_numbers<[1], [0], [0], [1], [0, 0, 1, 1], [], []>} : vector<8x128xf32>, vector<128x128xf32>, vector<8x128xf32> -> vector<8x128xf32>
    %19 = arith.addf %13, %18 : vector<8x128xf32>
    %c384 = arith.constant 384 : index
    %c0_14 = arith.constant 0 : index
    %20 = vector.load %arg1[%c384, %c0_14] : memref<1160x128xf32, #tpu.memory_space<vmem>>, vector<128x128xf32>
    %c896 = arith.constant 896 : index
    %c0_15 = arith.constant 0 : index
    %21 = vector.load %arg1[%c896, %c0_15] : memref<1160x128xf32, #tpu.memory_space<vmem>>, vector<128x128xf32>
    %cst_16 = arith.constant dense<0.000000e+00> : vector<8x128xf32>
    %22 = tpu.matmul %0, %20, %cst_16 {dimension_numbers = #tpu.dot_dimension_numbers<[1], [0], [0], [1], [0, 0, 1, 1], [], []>} : vector<8x128xf32>, vector<128x128xf32>, vector<8x128xf32> -> vector<8x128xf32>
    %23 = arith.mulf %22, %22 : vector<8x128xf32>
    %cst_17 = arith.constant dense<0.000000e+00> : vector<8x128xf32>
    %24 = tpu.matmul %23, %21, %cst_17 {dimension_numbers = #tpu.dot_dimension_numbers<[1], [0], [0], [1], [0, 0, 1, 1], [], []>} : vector<8x128xf32>, vector<128x128xf32>, vector<8x128xf32> -> vector<8x128xf32>
    %25 = arith.addf %19, %24 : vector<8x128xf32>
    %cst_18 = arith.constant 9.99999997E-7 : f32
    %26 = vector.broadcast %cst_18 : f32 to vector<8x128xf32>
    %27 = arith.maximumf %25, %26 : vector<8x128xf32>
    %28 = math.log %27 : vector<8x128xf32>
    %c1024 = arith.constant 1024 : index
    %c0_19 = arith.constant 0 : index
    %29 = vector.load %arg1[%c1024, %c0_19] : memref<1160x128xf32, #tpu.memory_space<vmem>>, vector<128x128xf32>
    %c1152 = arith.constant 1152 : index
    %c0_20 = arith.constant 0 : index
    %30 = vector.load %arg1[%c1152, %c0_20] : memref<1160x128xf32, #tpu.memory_space<vmem>>, vector<1x128xf32>
    %cst_21 = arith.constant dense<0.000000e+00> : vector<8x128xf32>
    %31 = tpu.matmul %28, %29, %cst_21 {dimension_numbers = #tpu.dot_dimension_numbers<[1], [0], [0], [1], [0, 0, 1, 1], [], []>} : vector<8x128xf32>, vector<128x128xf32>, vector<8x128xf32> -> vector<8x128xf32>
    %32 = vector.broadcast %30 : vector<1x128xf32> to vector<8x128xf32>
    %33 = arith.addf %31, %32 : vector<8x128xf32>
    %c0_22 = arith.constant 0 : index
    %c0_23 = arith.constant 0 : index
    %34 = vector.load %arg2[%c0_22, %c0_23] : memref<8x128xf32, #tpu.memory_space<vmem>>, vector<8x128xf32>
    tpu.vector_store %arg2[%c0_22, %c0_23], %33 {strides = array<i32>} : memref<8x128xf32, #tpu.memory_space<vmem>>, vector<8x128xf32>,
    return
  }
}

</mosaic_0001>

<bundles_post_ra>
// kernel: tpu_custom_call.1
= control target key start
LH: loop header
LB: loop body
LE: loop exit
PB: predicated region body
PF: predicated region fallthrough
CT: control target
= control target key end

     0   :  { %7 = vsyncpa [#allocation3], 0  ;;  %s1779_s0 = inlined_call_operand.hbm [shape: f32[8,128], index: 0, kind: input, shape index: {}]   ;;  %s1780_s1 = inlined_call_operand.hbm [shape: f32[1160,128], index: 1, kind: input, shape index: {}]   ;;  %s1781_s2 = inlined_call_operand.hbm [shape: f32[8,128], index: 2, kind: output, shape index: {}]  }
   0x1   :  { %8 = vsyncpa [#allocation6], 0 }
   0x2   :  { %9 = vsyncpa [#allocation4], 0  ;;  %s1617_s9 = smov [#allocation2]   ;;  %s1618_s11 = smov [#allocation5]  }
   0x3   :  { %s16_s10 = sshll.u32 %s1617_s9, 4  ;;  %s25_s12 = sshll.u32 %s1618_s11, 4  ;;  %s17_s10 = int_to_ptr.vmem [resolvable:$true] %s16_s10  ;;  %s1640_s12 = int_to_ptr.vmem [resolvable:$true] %s25_s12 }
   0x4   :  { %s1545_s15 = scalar_lea.hbm %s1779_s0, 128 }
   0x5   :  { %p1546_p0 = scmp.ne.s32.totalorder %s1779_s0, %s1545_s15  ;;  %p1549_p1 = scmp.lt.u32.totalorder %s1545_s15, %s1779_s0 }
   0x7   :  { %p1551_p2 = pnand %p1549_p1, %p1546_p0 }
   0x9   :  { %1554 = shalt.err (!%p1551_p2)
}
   0xa   :  { %s1555_s20 = scalar_lea.vmem %s17_s10, 128  ;;  %p1560_p4 = scmp.lt.s32.totalorder %s17_s10, %s17_s10 }
   0xb   :  { %p1556_p3 = scmp.ne.s32.totalorder %s17_s10, %s1555_s20  ;;  %p1561_p5 = scmp.lt.s32.totalorder %s1555_s20, %s1555_s20 }
   0xd   :  { %p1562_p6 = por %p1561_p5, %p1560_p4 }
   0xf   :  { %p1563_p7 = pnand %p1562_p6, %p1556_p3 }
  0x11   :  { %1566 = shalt.err (!%p1563_p7)
}
  0x12   :  { %19 = dma.hbm_to_vmem [thread:$0]  %s1779_s0, 128, %s17_s10, [#allocation3]  }
  0x13   :  { %s1567_s25 = scalar_lea.hbm %s1780_s1, 18560 }
  0x14   :  { %p1568_p8 = scmp.ne.s32.totalorder %s1780_s1, %s1567_s25  ;;  %p1571_p9 = scmp.lt.u32.totalorder %s1567_s25, %s1780_s1 }
  0x16   :  { %p1573_p10 = pnand %p1571_p9, %p1568_p8 }
  0x18   :  { %1576 = shalt.err (!%p1573_p10)
}
  0x19   :  { %s1577_s30 = scalar_lea.vmem %s1640_s12, 18560  ;;  %p1582_p12 = scmp.lt.s32.totalorder %s1640_s12, %s1640_s12 }
  0x1a   :  { %p1578_p11 = scmp.ne.s32.totalorder %s1640_s12, %s1577_s30  ;;  %p1583_p13 = scmp.lt.s32.totalorder %s1577_s30, %s1577_s30 }
  0x1c   :  { %p1584_p0 = por %p1583_p13, %p1582_p12 }
  0x1e   :  { %p1585_p1 = pnand %p1584_p0, %p1578_p11 }
  0x20   :  { %1588 = shalt.err (!%p1585_p1)
}
  0x21   :  { %s1619_s0 = smov 128   ;;  %s1620_s3 = smov 8  }
  0x22   :  { %31 = dma.hbm_to_vmem [thread:$0]  %s1780_s1, 18560, %s1640_s12, [#allocation6], %s1619_s0, %s1619_s0, %s1620_s3  }
  0x23   :  { %1611 = dma.done.wait [#allocation3], 128  }
  0x24   :  { %1612 = vsyncadd [#allocation3], 4294967168 }
  0x25   :  { %1613 = dma.done.wait [#allocation6], 18560  }
  0x26   :  { %1614 = vsyncadd [#allocation6], 4294948736  ;;  %v1621_v0 = vmov 0.0|0.0   ;;  %vm1622_vm0 = vmmov 0   ;;  %v1623_v1 = vmov 0.0   ;;  %v142_v2 = vld [vmem:[#allocation5 + $0x80] sm:$0xff] }
  0x27   :  { %1337 = vmatprep.subr.bf16.mxu1 %v1621_v0  ;;  %1313 = vmatprep.subr.bf16.mxu0 %v1621_v0  ;;  %v143_v3 = vld [vmem:[#allocation5 + $0x88] sm:$0xff]  ;;  %v144_v4 = vld [vmem:[#allocation5 + $0x90] sm:$0xff]  ;;  %v145_v6 = vld [vmem:[#allocation5 + $0x98] sm:$0xff]  ;;  %s1624_s1 = smov [#allocation7]  }
  0x28   :  { %1065 = vmatprep.mubr.msk.f32.mxu1 %vm1622_vm0, %v1623_v1  ;;  %1030 = vmatprep.mubr.msk.f32.mxu0 %vm1622_vm0, %v1623_v1  ;;  %v1338_v5 = vpack.c.bf16 %v143_v3, %v142_v2  ;;  %v1341_v7 = vpack.c.bf16 %v145_v6, %v144_v4  ;;  %v146_v8 = vld [vmem:[#allocation5 + $0xa0] sm:$0xff]  ;;  %v147_v9 = vld [vmem:[#allocation5 + $0xa8] sm:$0xff]  ;;  %v41_v13 = vld [vmem:[#allocation5 + $0x10] sm:$0xff]  ;;  %s834_s6 = sshll.u32 %s1624_s1, 4  ;;  %s835_s6 = int_to_ptr.vmem [resolvable:$true] %s834_s6 }
  0x29   :  { %v39_v10 = vld [vmem:[#allocation5] sm:$0xff]  ;;  %v40_v11 = vld [vmem:[#allocation5 + $0x8] sm:$0xff]  ;;  %v42_v14 = vld [vmem:[#allocation5 + $0x18] sm:$0xff]  ;;  %v1344_v15 = vpack.c.bf16 %v147_v9, %v146_v8  ;;  %s1589_s7 = scalar_lea.vmem %s835_s6, 128  ;;  %p1594_p3 = scmp.lt.s32.totalorder %s835_s6, %s835_s6 }
  0x2a   :  { %1339 = vmatpush3.bf16.msra.mxu1 %v1338_v5  ;;  %v1314_v12 = vpack.c.bf16 %v40_v11, %v39_v10  ;;  %v148_v16 = vld [vmem:[#allocation5 + $0xb0] sm:$0xff]  ;;  %v149_v17 = vld [vmem:[#allocation5 + $0xb8] sm:$0xff]  ;;  %v1317_v18 = vpack.c.bf16 %v42_v14, %v41_v13  ;;  %v43_v19 = vld [vmem:[#allocation5 + $0x20] sm:$0xff]  ;;  %p1590_p2 = scmp.ne.s32.totalorder %s835_s6, %s1589_s7  ;;  %p1595_p4 = scmp.lt.s32.totalorder %s1589_s7, %s1589_s7 }
  0x2b   :  { %1340 = vmatprep.subr.bf16.mxu1 %v1621_v0  ;;  %v44_v20 = vld [vmem:[#allocation5 + $0x28] sm:$0xff]  ;;  %v1347_v21 = vpack.c.bf16 %v149_v17, %v148_v16  ;;  %v150_v22 = vld [vmem:[#allocation5 + $0xc0] sm:$0xff]  ;;  %v45_v25 = vld [vmem:[#allocation5 + $0x30] sm:$0xff] }
  0x2c   :  { %1315 = vmatpush3.bf16.msra.mxu0 %v1314_v12  ;;  %v151_v23 = vld [vmem:[#allocation5 + $0xc8] sm:$0xff]  ;;  %v1320_v24 = vpack.c.bf16 %v44_v20, %v43_v19  ;;  %v46_v26 = vld [vmem:[#allocation5 + $0x38] sm:$0xff]  ;;  %v152_v28 = vld [vmem:[#allocation5 + $0xd0] sm:$0xff]  ;;  %p1596_p5 = por %p1595_p4, %p1594_p3 }
  0x2d   :  { %1316 = vmatprep.subr.bf16.mxu0 %v1621_v0  ;;  %v1350_v27 = vpack.c.bf16 %v151_v23, %v150_v22  ;;  %v153_v29 = vld [vmem:[#allocation5 + $0xd8] sm:$0xff]  ;;  %v1323_v30 = vpack.c.bf16 %v46_v26, %v45_v25  ;;  %v47_v31 = vld [vmem:[#allocation5 + $0x40] sm:$0xff]  ;;  %v48_v32 = vld [vmem:[#allocation5 + $0x48] sm:$0xff] }
  0x2e   :  { %1342 = vmatpush3.bf16.msra.mxu1 %v1341_v7  ;;  %v1353_v33 = vpack.c.bf16 %v153_v29, %v152_v28  ;;  %v154_v34 = vld [vmem:[#allocation5 + $0xe0] sm:$0xff]  ;;  %v155_v35 = vld [vmem:[#allocation5 + $0xe8] sm:$0xff]  ;;  %v1326_v36 = vpack.c.bf16 %v48_v32, %v47_v31  ;;  %v49_v37 = vld [vmem:[#allocation5 + $0x50] sm:$0xff]  ;;  %p1597_p6 = pnand %p1596_p5, %p1590_p2 }
  0x2f   :  { %1343 = vmatprep.subr.bf16.mxu1 %v1621_v0  ;;  %v50_v38 = vld [vmem:[#allocation5 + $0x58] sm:$0xff]  ;;  %v1356_v39 = vpack.c.bf16 %v155_v35, %v154_v34  ;;  %v156_v40 = vld [vmem:[#allocation5 + $0xf0] sm:$0xff]  ;;  %v51_v43 = vld [vmem:[#allocation5 + $0x60] sm:$0xff] }
  0x30   :  { %1318 = vmatpush3.bf16.msra.mxu0 %v1317_v18  ;;  %v157_v41 = vld [vmem:[#allocation5 + $0xf8] sm:$0xff]  ;;  %v1329_v42 = vpack.c.bf16 %v50_v38, %v49_v37  ;;  %v52_v44 = vld [vmem:[#allocation5 + $0x68] sm:$0xff]  ;;  %v385_v47 = vld [vmem:[#allocation5 + $0x100] sm:$0xff] }
  0x31   :  { %1319 = vmatprep.subr.bf16.mxu0 %v1621_v0  ;;  %v1359_v45 = vpack.c.bf16 %v157_v41, %v156_v40  ;;  %v1332_v46 = vpack.c.bf16 %v52_v44, %v51_v43  ;;  %v386_v48 = vld [vmem:[#allocation5 + $0x108] sm:$0xff]  ;;  %v53_v49 = vld [vmem:[#allocation5 + $0x70] sm:$0xff]  ;;  %v54_v50 = vld [vmem:[#allocation5 + $0x78] sm:$0xff] }
  0x32   :  { %1345 = vmatpush3.bf16.msra.mxu1 %v1344_v15  ;;  %v1690_v51 = vld [vmem:[#allocation2] sm:$0xff]  ;;  %v1410_v52 = vpack.c.bf16 %v386_v48, %v385_v47  ;;  %v1335_v53 = vpack.c.bf16 %v54_v50, %v53_v49  ;;  %v387_v54 = vld [vmem:[#allocation5 + $0x110] sm:$0xff]  ;;  %v158_v56 = vld [vmem:[#allocation5 + $0x280] sm:$0xff] }
  0x33   :  { %1346 = vmatprep.subr.bf16.mxu1 %v1621_v0  ;;  %v388_v55 = vld [vmem:[#allocation5 + $0x118] sm:$0xff]  ;;  %v159_v57 = vld [vmem:[#allocation5 + $0x288] sm:$0xff]  ;;  %v389_v59 = vld [vmem:[#allocation5 + $0x120] sm:$0xff] }
  0x34   :  { %1321 = vmatpush3.bf16.msra.mxu0 %v1320_v24  ;;  %v1413_v58 = vpack.c.bf16 %v388_v55, %v387_v54  ;;  %v390_v60 = vld [vmem:[#allocation5 + $0x128] sm:$0xff]  ;;  %v1362_v61 = vpack.c.bf16 %v159_v57, %v158_v56  ;;  %v160_v62 = vld [vmem:[#allocation5 + $0x290] sm:$0xff]  ;;  %v161_v63 = vld [vmem:[#allocation5 + $0x298] sm:$0xff] }
  0x35   :  { %1322 = vmatprep.subr.bf16.mxu0 %v1621_v0  ;;  %v1416_v2 = vpack.c.bf16 %v390_v60, %v389_v59  ;;  %v391_v3 = vld [vmem:[#allocation5 + $0x130] sm:$0xff]  ;;  %v392_v4 = vld [vmem:[#allocation5 + $0x138] sm:$0xff]  ;;  %v1365_v5 = vpack.c.bf16 %v161_v63, %v160_v62  ;;  %v162_v6 = vld [vmem:[#allocation5 + $0x2a0] sm:$0xff] }
  0x36   :  { %1348 = vmatpush3.bf16.msra.mxu1 %v1347_v21  ;;  %v163_v7 = vld [vmem:[#allocation5 + $0x2a8] sm:$0xff]  ;;  %v1419_v8 = vpack.c.bf16 %v392_v4, %v391_v3  ;;  %v393_v9 = vld [vmem:[#allocation5 + $0x140] sm:$0xff]  ;;  %v164_v12 = vld [vmem:[#allocation5 + $0x2b0] sm:$0xff] }
  0x37   :  { %1349 = vmatprep.subr.bf16.mxu1 %v1621_v0  ;;  %v394_v10 = vld [vmem:[#allocation5 + $0x148] sm:$0xff]  ;;  %v1368_v11 = vpack.c.bf16 %v163_v7, %v162_v6  ;;  %v165_v13 = vld [vmem:[#allocation5 + $0x2b8] sm:$0xff]  ;;  %v395_v15 = vld [vmem:[#allocation5 + $0x150] sm:$0xff] }
  0x38   :  { %1324 = vmatpush3.bf16.msra.mxu0 %v1323_v30  ;;  %v1422_v14 = vpack.c.bf16 %v394_v10, %v393_v9  ;;  %v396_v16 = vld [vmem:[#allocation5 + $0x158] sm:$0xff]  ;;  %v1371_v17 = vpack.c.bf16 %v165_v13, %v164_v12  ;;  %v166_v18 = vld [vmem:[#allocation5 + $0x2c0] sm:$0xff]  ;;  %v167_v19 = vld [vmem:[#allocation5 + $0x2c8] sm:$0xff] }
  0x39   :  { %1325 = vmatprep.subr.bf16.mxu0 %v1621_v0  ;;  %v1425_v20 = vpack.c.bf16 %v396_v16, %v395_v15  ;;  %v397_v21 = vld [vmem:[#allocation5 + $0x160] sm:$0xff]  ;;  %v398_v22 = vld [vmem:[#allocation5 + $0x168] sm:$0xff]  ;;  %v1374_v23 = vpack.c.bf16 %v167_v19, %v166_v18  ;;  %v168_v24 = vld [vmem:[#allocation5 + $0x2d0] sm:$0xff] }
  0x3a   :  { %1351 = vmatpush3.bf16.msra.mxu1 %v1350_v27  ;;  %v169_v25 = vld [vmem:[#allocation5 + $0x2d8] sm:$0xff]  ;;  %v1428_v26 = vpack.c.bf16 %v398_v22, %v397_v21  ;;  %v399_v27 = vld [vmem:[#allocation5 + $0x170] sm:$0xff]  ;;  %v170_v30 = vld [vmem:[#allocation5 + $0x2e0] sm:$0xff] }
  0x3b   :  { %1352 = vmatprep.subr.bf16.mxu1 %v1621_v0  ;;  %v400_v28 = vld [vmem:[#allocation5 + $0x178] sm:$0xff]  ;;  %v1377_v29 = vpack.c.bf16 %v169_v25, %v168_v24  ;;  %v171_v31 = vld [vmem:[#allocation5 + $0x2e8] sm:$0xff]  ;;  %v563_v43 = vld [vmem:[#allocation5 + $0x1a0] sm:$0xff] }
  0x3c   :  { %1327 = vmatpush3.bf16.msra.mxu0 %v1326_v36  ;;  %v1431_v32 = vpack.c.bf16 %v400_v28, %v399_v27  ;;  %v560_v34 = vld [vmem:[#allocation5 + $0x188] sm:$0xff]  ;;  %v1380_v35 = vpack.c.bf16 %v171_v31, %v170_v30  ;;  %v172_v36 = vld [vmem:[#allocation5 + $0x2f0] sm:$0xff]  ;;  %v173_v37 = vld [vmem:[#allocation5 + $0x2f8] sm:$0xff] }
  0x3d   :  { %1328 = vmatprep.subr.bf16.mxu0 %v1621_v0  ;;  %v562_v40 = vld [vmem:[#allocation5 + $0x198] sm:$0xff]  ;;  %v1383_v41 = vpack.c.bf16 %v173_v37, %v172_v36  ;;  %v564_v44 = vld [vmem:[#allocation5 + $0x1a8] sm:$0xff]  ;;  %v567_v49 = vld [vmem:[#allocation5 + $0x1c0] sm:$0xff] }
  0x3e   :  { %1354 = vmatpush3.bf16.msra.mxu1 %v1353_v33  ;;  %v559_v33 = vld [vmem:[#allocation5 + $0x180] sm:$0xff]  ;;  %v566_v47 = vld [vmem:[#allocation5 + $0x1b8] sm:$0xff]  ;;  %v568_v50 = vld [vmem:[#allocation5 + $0x1c8] sm:$0xff] }
  0x3f   :  { %1355 = vmatprep.subr.bf16.mxu1 %v1621_v0  ;;  %v1458_v38 = vpack.c.bf16 %v560_v34, %v559_v33  ;;  %v570_v54 = vld [vmem:[#allocation5 + $0x1d8] sm:$0xff]  ;;  %v571_v56 = vld [vmem:[#allocation5 + $0x1e0] sm:$0xff]  ;;  %v572_v57 = vld [vmem:[#allocation5 + $0x1e8] sm:$0xff] }
  0x40   :  { %1330 = vmatpush3.bf16.msra.mxu0 %v1329_v42  ;;  %v573_v59 = vld [vmem:[#allocation5 + $0x1f0] sm:$0xff]  ;;  %v574_v60 = vld [vmem:[#allocation5 + $0x1f8] sm:$0xff]  ;;  %v736_v62 = vld [vmem:[#allocation5 + $0x400] sm:$0xff] }
  0x41   :  { %1331 = vmatprep.subr.bf16.mxu0 %v1621_v0  ;;  %v737_v63 = vld [vmem:[#allocation5 + $0x408] sm:$0xff]  ;;  %v739_v4 = vld [vmem:[#allocation5 + $0x418] sm:$0xff]  ;;  %v740_v6 = vld [vmem:[#allocation5 + $0x420] sm:$0xff] }
  0x42   :  { %1357 = vmatpush3.bf16.msra.mxu1 %v1356_v39  ;;  %v561_v39 = vld [vmem:[#allocation5 + $0x190] sm:$0xff]  ;;  %v1506_v3 = vpack.c.bf16 %v737_v63, %v736_v62  ;;  %v741_v7 = vld [vmem:[#allocation5 + $0x428] sm:$0xff]  ;;  %v58_v18 = vld [vmem:[#allocation5 + $0x218] sm:$0xff] }
  0x43   :  { %1358 = vmatprep.subr.bf16.mxu1 %v1621_v0  ;;  %v1461_v42 = vpack.c.bf16 %v562_v40, %v561_v39  ;;  %v742_v9 = vld [vmem:[#allocation5 + $0x430] sm:$0xff]  ;;  %v56_v12 = vld [vmem:[#allocation5 + $0x208] sm:$0xff]  ;;  %v63_v28 = vld [vmem:[#allocation5 + $0x240] sm:$0xff] }
  0x44   :  { %1333 = vmatpush3.bf16.msra.mxu0 %v1332_v46  ;;  %v565_v46 = vld [vmem:[#allocation5 + $0x1b0] sm:$0xff]  ;;  %v60_v21 = vld [vmem:[#allocation5 + $0x228] sm:$0xff]  ;;  %v67_v34 = vld [vmem:[#allocation5 + $0x260] sm:$0xff] }
  0x45   :  { %1334 = vmatprep.subr.bf16.mxu0 %v1621_v0  ;;  %v1467_v48 = vpack.c.bf16 %v566_v47, %v565_v46  ;;  %v61_v25 = vld [vmem:[#allocation5 + $0x230] sm:$0xff]  ;;  %v401_v40 = vld [vmem:[#allocation5 + $0x300] sm:$0xff]  ;;  %v404_v46 = vld [vmem:[#allocation5 + $0x318] sm:$0xff] }
  0x46   :  { %1360 = vmatpush3.bf16.msra.mxu1 %v1359_v45  ;;  %v1464_v45 = vpack.c.bf16 %v564_v44, %v563_v43  ;;  %v65_v31 = vld [vmem:[#allocation5 + $0x250] sm:$0xff]  ;;  %v413_v62 = vld [vmem:[#allocation5 + $0x360] sm:$0xff]  ;;  %v414_v63 = vld [vmem:[#allocation5 + $0x368] sm:$0xff] }
  0x47   :  { %1409 = vmatprep.subr.bf16.mxu1 %v1621_v0  ;;  %v69_v37 = vld [vmem:[#allocation5 + $0x270] sm:$0xff] }
  0x48   :  { %1336 = vmatpush3.bf16.msra.mxu0 %v1335_v53  ;;  %v569_v53 = vld [vmem:[#allocation5 + $0x1d0] sm:$0xff] }
  0x49   :  { %1066 = vmatmul.mubr.f32.vlgmr.msra.gmra.mrb[0].mxu1 %v1690_v51  ;;  %1361 = vmatprep.subr.bf16.mxu0 %v1621_v0  ;;  %v1473_v55 = vpack.c.bf16 %v570_v54, %v569_v53  ;;  %v407_v53 = vld [vmem:[#allocation5 + $0x330] sm:$0xff]  ;;  %v408_v54 = vld [vmem:[#allocation5 + $0x338] sm:$0xff] }
  0x4a   :  { %1411 = vmatpush3.bf16.msra.mxu1 %v1410_v52  ;;  %1170 = vmatprep.mubr.msk.f32.mxu1 %vm1622_vm0, %v1623_v1  ;;  %v1470_v52 = vpack.c.bf16 %v568_v50, %v567_v49  ;;  %v405_v49 = vld [vmem:[#allocation5 + $0x320] sm:$0xff]  ;;  %v406_v50 = vld [vmem:[#allocation5 + $0x328] sm:$0xff] }
  0x4b   :  { %1412 = vmatprep.subr.bf16.mxu1 %v1621_v0  ;;  %1031 = vmatmul.mubr.f32.vlgmr.msra.gmra.mrb[0].mxu0 %v1690_v51 }
  0x4c   :  { %1363 = vmatpush3.bf16.msra.mxu0 %v1362_v61  ;;  %1100 = vmatprep.mubr.msk.f32.mxu0 %vm1622_vm0, %v1623_v1  ;;  %v1479_v61 = vpack.c.bf16 %v574_v60, %v573_v59  ;;  %v411_v59 = vld [vmem:[#allocation5 + $0x350] sm:$0xff]  ;;  %v412_v60 = vld [vmem:[#allocation5 + $0x358] sm:$0xff] }
  0x4d   :  { %1364 = vmatprep.subr.bf16.mxu0 %v1621_v0 }
  0x4e   :  { %1414 = vmatpush3.bf16.msra.mxu1 %v1413_v58  ;;  %v1476_v58 = vpack.c.bf16 %v572_v57, %v571_v56  ;;  %v409_v56 = vld [vmem:[#allocation5 + $0x340] sm:$0xff]  ;;  %v410_v57 = vld [vmem:[#allocation5 + $0x348] sm:$0xff] }
  0x4f   :  { %1415 = vmatprep.subr.bf16.mxu1 %v1621_v0 }
  0x50   :  { %1366 = vmatpush3.bf16.msra.mxu0 %v1365_v5 }
  0x51   :  { %1367 = vmatprep.subr.bf16.mxu0 %v1621_v0 }
  0x52   :  { %1417 = vmatpush3.bf16.msra.mxu1 %v1416_v2  ;;  %v738_v2 = vld [vmem:[#allocation5 + $0x410] sm:$0xff] }
  0x53   :  { %1418 = vmatprep.subr.bf16.mxu1 %v1621_v0  ;;  %v1509_v5 = vpack.c.bf16 %v739_v4, %v738_v2  ;;  %v1452_v2 = vpack.c.bf16 %v414_v63, %v413_v62  ;;  %v416_v4 = vld [vmem:[#allocation5 + $0x378] sm:$0xff] }
  0x54   :  { %1369 = vmatpush3.bf16.msra.mxu0 %v1368_v11  ;;  %v55_v11 = vld [vmem:[#allocation5 + $0x200] sm:$0xff] }
  0x55   :  { %1370 = vmatprep.subr.bf16.mxu0 %v1621_v0 }
  0x56   :  { %1420 = vmatpush3.bf16.msra.mxu1 %v1419_v8  ;;  %v1512_v8 = vpack.c.bf16 %v741_v7, %v740_v6  ;;  %v575_v6 = vld [vmem:[#allocation5 + $0x380] sm:$0xff]  ;;  %v576_v7 = vld [vmem:[#allocation5 + $0x388] sm:$0xff] }
  0x57   :  { %1421 = vmatprep.subr.bf16.mxu1 %v1621_v0 }
  0x58   :  { %1372 = vmatpush3.bf16.msra.mxu0 %v1371_v17  ;;  %v57_v17 = vld [vmem:[#allocation5 + $0x210] sm:$0xff] }
  0x59   :  { %1373 = vmatprep.subr.bf16.mxu0 %v1621_v0  ;;  %v1389_v19 = vpack.c.bf16 %v58_v18, %v57_v17  ;;  %v581_v17 = vld [vmem:[#allocation5 + $0x3b0] sm:$0xff]  ;;  %v582_v18 = vld [vmem:[#allocation5 + $0x3b8] sm:$0xff] }
  0x5a   :  { %1423 = vmatpush3.bf16.msra.mxu1 %v1422_v14  ;;  %v1386_v14 = vpack.c.bf16 %v56_v12, %v55_v11  ;;  %v578_v11 = vld [vmem:[#allocation5 + $0x398] sm:$0xff] }
  0x5b   :  { %1424 = vmatprep.subr.bf16.mxu1 %v1621_v0 }
  0x5c   :  { %1375 = vmatpush3.bf16.msra.mxu0 %v1374_v23 }
  0x5d   :  { %1376 = vmatprep.subr.bf16.mxu0 %v1621_v0 }
  0x5e   :  { %1426 = vmatpush3.bf16.msra.mxu1 %v1425_v20  ;;  %v59_v20 = vld [vmem:[#allocation5 + $0x220] sm:$0xff] }
  0x5f   :  { %1427 = vmatprep.subr.bf16.mxu1 %v1621_v0  ;;  %v1392_v24 = vpack.c.bf16 %v60_v21, %v59_v20  ;;  %v583_v20 = vld [vmem:[#allocation5 + $0x3c0] sm:$0xff]  ;;  %v584_v21 = vld [vmem:[#allocation5 + $0x3c8] sm:$0xff] }
  0x60   :  { %1378 = vmatpush3.bf16.msra.mxu0 %v1377_v29  ;;  %v64_v29 = vld [vmem:[#allocation5 + $0x248] sm:$0xff] }
  0x61   :  { %1379 = vmatprep.subr.bf16.mxu0 %v1621_v0  ;;  %v1398_v30 = vpack.c.bf16 %v64_v29, %v63_v28  ;;  %v589_v28 = vld [vmem:[#allocation5 + $0x3f0] sm:$0xff]  ;;  %v590_v29 = vld [vmem:[#allocation5 + $0x3f8] sm:$0xff] }
  0x62   :  { %1429 = vmatpush3.bf16.msra.mxu1 %v1428_v26  ;;  %v62_v26 = vld [vmem:[#allocation5 + $0x238] sm:$0xff] }
  0x63   :  { %1430 = vmatprep.subr.bf16.mxu1 %v1621_v0  ;;  %v1395_v27 = vpack.c.bf16 %v62_v26, %v61_v25  ;;  %v587_v25 = vld [vmem:[#allocation5 + $0x3e0] sm:$0xff]  ;;  %v588_v26 = vld [vmem:[#allocation5 + $0x3e8] sm:$0xff] }
  0x64   :  { %1381 = vmatpush3.bf16.msra.mxu0 %v1380_v35  ;;  %v68_v35 = vld [vmem:[#allocation5 + $0x268] sm:$0xff] }
  0x65   :  { %1382 = vmatprep.subr.bf16.mxu0 %v1621_v0  ;;  %v1404_v36 = vpack.c.bf16 %v68_v35, %v67_v34  ;;  %v746_v35 = vld [vmem:[#allocation5 + $0x450] sm:$0xff] }
  0x66   :  { %1432 = vmatpush3.bf16.msra.mxu1 %v1431_v32  ;;  %v66_v32 = vld [vmem:[#allocation5 + $0x258] sm:$0xff] }
  0x67   :  { %1457 = vmatprep.subr.bf16.mxu1 %v1621_v0  ;;  %v1401_v33 = vpack.c.bf16 %v66_v32, %v65_v31  ;;  %v744_v32 = vld [vmem:[#allocation5 + $0x440] sm:$0xff] }
  0x68   :  { %1384 = vmatpush3.bf16.msra.mxu0 %v1383_v41  ;;  %v402_v41 = vld [vmem:[#allocation5 + $0x308] sm:$0xff] }
  0x69   :  { %1171 = vmatmul.mubr.f32.vlgmr.msra.gmra.mrb[2].mxu1 %v1690_v51  ;;  %1385 = vmatprep.subr.bf16.mxu0 %v1621_v0  ;;  %v1434_v43 = vpack.c.bf16 %v402_v41, %v401_v40  ;;  %v750_v41 = vld [vmem:[#allocation5 + $0x470] sm:$0xff] }
  0x6a   :  { %1459 = vmatpush3.bf16.msra.mxu1 %v1458_v38  ;;  %1240 = vmatprep.mubr.msk.f32.mxu1 %vm1622_vm0, %v1623_v1  ;;  %v70_v38 = vld [vmem:[#allocation5 + $0x278] sm:$0xff] }
  0x6b   :  { %1460 = vmatprep.subr.bf16.mxu1 %v1621_v0  ;;  %v1407_v39 = vpack.c.bf16 %v70_v38, %v69_v37  ;;  %v748_v38 = vld [vmem:[#allocation5 + $0x460] sm:$0xff] }
  0x6e   :  { %1462 = vmatpush3.bf16.msra.mxu1 %v1461_v42 }
  0x6f   :  { %1463 = vmatprep.subr.bf16.mxu1 %v1621_v0 }
  0x72   :  { %1465 = vmatpush3.bf16.msra.mxu1 %v1464_v45  ;;  %v403_v45 = vld [vmem:[#allocation5 + $0x310] sm:$0xff] }
  0x73   :  { %1466 = vmatprep.subr.bf16.mxu1 %v1621_v0 }
  0x76   :  { %1468 = vmatpush3.bf16.msra.mxu1 %v1467_v48  ;;  %v1437_v48 = vpack.c.bf16 %v404_v46, %v403_v45 }
  0x77   :  { %1469 = vmatprep.subr.bf16.mxu1 %v1621_v0 }
  0x7a   :  { %1471 = vmatpush3.bf16.msra.mxu1 %v1470_v52  ;;  %v1440_v52 = vpack.c.bf16 %v406_v50, %v405_v49  ;;  %v844_v49 = vld [vmem:[#allocation5 + $0x480] ss:$0 sm:$0xff] }
  0x7b   :  { %1472 = vmatprep.subr.bf16.mxu1 %v1621_v0 }
  0x7e   :  { %1474 = vmatpush3.bf16.msra.mxu1 %v1473_v55  ;;  %v1443_v55 = vpack.c.bf16 %v408_v54, %v407_v53 }
  0x7f   :  { %1475 = vmatprep.subr.bf16.mxu1 %v1621_v0 }
  0x82   :  { %1477 = vmatpush3.bf16.msra.mxu1 %v1476_v58  ;;  %v1446_v58 = vpack.c.bf16 %v410_v57, %v409_v56 }
  0x83   :  { %1478 = vmatprep.subr.bf16.mxu1 %v1621_v0 }
  0x86   :  { %1480 = vmatpush3.bf16.msra.mxu1 %v1479_v61  ;;  %v1449_v61 = vpack.c.bf16 %v412_v60, %v411_v59 }
  0x87   :  { %1505 = vmatprep.subr.bf16.mxu1 %v1621_v0 }
  0x89   :  { %1241 = vmatmul.mubr.f32.vlgmr.msra.gmra.mrb[4].mxu1 %v1690_v51  ;;  %v743_v51 = vld [vmem:[#allocation5 + $0x438] sm:$0xff] }
  0x8a   :  { %1310 = vmatprep.mubr.msk.f32.mxu1 %vm1622_vm0, %v1623_v1  ;;  %1507 = vmatpush3.bf16.msra.mxu1 %v1506_v3  ;;  %v1515_v10 = vpack.c.bf16 %v743_v51, %v742_v9  ;;  %v415_v3 = vld [vmem:[#allocation5 + $0x370] sm:$0xff]  ;;  %v1482_v9 = vpack.c.bf16 %v576_v7, %v575_v6 }
  0x8b   :  { %1508 = vmatprep.subr.bf16.mxu1 %v1621_v0 }
  0x8e   :  { %1510 = vmatpush3.bf16.msra.mxu1 %v1509_v5  ;;  %v1455_v5 = vpack.c.bf16 %v416_v4, %v415_v3 }
  0x8f   :  { %1511 = vmatprep.subr.bf16.mxu1 %v1621_v0 }
  0x92   :  { %1513 = vmatpush3.bf16.msra.mxu1 %v1512_v8 }
  0x93   :  { %1514 = vmatprep.subr.bf16.mxu1 %v1621_v0 }
  0x96   :  { %1516 = vmatpush3.bf16.msra.mxu1 %v1515_v10  ;;  %v577_v10 = vld [vmem:[#allocation5 + $0x390] sm:$0xff] }
  0x97   :  { %1517 = vmatprep.subr.bf16.mxu1 %v1621_v0 }
 0x11c   :  { %v240_v13 = vpop.f32.mrb[0].mxu1 }
 0x11d   :  { %v244_v15 = vmul.f32 %v240_v13, %v240_v13  ;;  %v1067_v16 = vpop.f32.mrb[1].mxu1  ;;  %v1485_v13 = vpack.c.bf16 %v578_v11, %v577_v10 }
 0x11e   :  { %v137_v22 = vpop.f32.mrb[0].mxu0 }
 0x11f   :  { %1101 = vmatmul.mubr.f32.vlgmr.msra.gmra.mrb[2].mxu0 %v244_v15  ;;  %v1032_v23 = vpop.f32.mrb[1].mxu0  ;;  %v141_v42 = vmul.f32 %v137_v22, %v137_v22  ;;  %v580_v15 = vld [vmem:[#allocation5 + $0x3a8] sm:$0xff]  ;;  %v1494_v22 = vpack.c.bf16 %v584_v21, %v583_v20 }
 0x120   :  { %1387 = vmatpush3.bf16.msra.mxu0 %v1386_v14  ;;  %1135 = vmatprep.mubr.msk.f32.mxu0 %vm1622_vm0, %v1623_v1  ;;  %v579_v14 = vld [vmem:[#allocation5 + $0x3a0] sm:$0xff]  ;;  %v586_v23 = vld [vmem:[#allocation5 + $0x3d8] sm:$0xff] }
 0x121   :  { %1388 = vmatprep.subr.bf16.mxu0 %v1621_v0  ;;  %v1488_v16 = vpack.c.bf16 %v580_v15, %v579_v14 }
 0x124   :  { %1390 = vmatpush3.bf16.msra.mxu0 %v1389_v19  ;;  %v1491_v19 = vpack.c.bf16 %v582_v18, %v581_v17 }
 0x125   :  { %1391 = vmatprep.subr.bf16.mxu0 %v1621_v0 }
 0x128   :  { %1393 = vmatpush3.bf16.msra.mxu0 %v1392_v24 }
 0x129   :  { %1394 = vmatprep.subr.bf16.mxu0 %v1621_v0 }
 0x12c   :  { %1396 = vmatpush3.bf16.msra.mxu0 %v1395_v27  ;;  %v1500_v27 = vpack.c.bf16 %v588_v26, %v587_v25 }
 0x12d   :  { %1397 = vmatprep.subr.bf16.mxu0 %v1621_v0 }
 0x130   :  { %1399 = vmatpush3.bf16.msra.mxu0 %v1398_v30  ;;  %v1503_v30 = vpack.c.bf16 %v590_v29, %v589_v28 }
 0x131   :  { %1400 = vmatprep.subr.bf16.mxu0 %v1621_v0 }
 0x134   :  { %1402 = vmatpush3.bf16.msra.mxu0 %v1401_v33  ;;  %v745_v33 = vld [vmem:[#allocation5 + $0x448] sm:$0xff] }
 0x135   :  { %1403 = vmatprep.subr.bf16.mxu0 %v1621_v0  ;;  %v1518_v34 = vpack.c.bf16 %v745_v33, %v744_v32 }
 0x137   :  { %1519 = vmatpush3.bf16.msra.mxu1 %v1518_v34 }
 0x138   :  { %1405 = vmatpush3.bf16.msra.mxu0 %v1404_v36  ;;  %1520 = vmatprep.subr.bf16.mxu1 %v1621_v0  ;;  %v747_v36 = vld [vmem:[#allocation5 + $0x458] sm:$0xff] }
 0x139   :  { %1406 = vmatprep.subr.bf16.mxu0 %v1621_v0  ;;  %v1521_v37 = vpack.c.bf16 %v747_v36, %v746_v35 }
 0x13b   :  { %1522 = vmatpush3.bf16.msra.mxu1 %v1521_v37 }
 0x13c   :  { %1408 = vmatpush3.bf16.msra.mxu0 %v1407_v39  ;;  %v483_v44 = vpop.f32.mrb[2].mxu1  ;;  %1523 = vmatprep.subr.bf16.mxu1 %v1621_v0  ;;  %v749_v39 = vld [vmem:[#allocation5 + $0x468] sm:$0xff] }
 0x13d   :  { %1433 = vmatprep.subr.bf16.mxu0 %v1621_v0  ;;  %v1172_v47 = vpop.f32.mrb[3].mxu1  ;;  %v487_v8 = vmul.f32 %v483_v44, %v483_v44  ;;  %v1524_v40 = vpack.c.bf16 %v749_v39, %v748_v38 }
 0x13f   :  { %1136 = vmatmul.mubr.f32.vlgmr.msra.gmra.mrb[2].mxu0 %v141_v42  ;;  %1525 = vmatpush3.bf16.msra.mxu1 %v1524_v40  ;;  %v751_v42 = vld [vmem:[#allocation5 + $0x478] sm:$0xff] }
 0x140   :  { %1435 = vmatpush3.bf16.msra.mxu0 %v1434_v43  ;;  %1205 = vmatprep.mubr.msk.f32.mxu0 %vm1622_vm0, %v1623_v1  ;;  %v1527_v43 = vpack.c.bf16 %v751_v42, %v750_v41 }
 0x141   :  { %1436 = vmatprep.subr.bf16.mxu0 %v1621_v0  ;;  %1526 = vmatprep.subr.bf16.mxu1 %v1621_v0 }
 0x143   :  { %1528 = vmatpush3.bf16.msra.mxu1 %v1527_v43 }
 0x144   :  { %1438 = vmatpush3.bf16.msra.mxu0 %v1437_v48 }
 0x145   :  { %1439 = vmatprep.subr.bf16.mxu0 %v1621_v0 }
 0x148   :  { %1441 = vmatpush3.bf16.msra.mxu0 %v1440_v52 }
 0x149   :  { %1442 = vmatprep.subr.bf16.mxu0 %v1621_v0 }
 0x14c   :  { %1444 = vmatpush3.bf16.msra.mxu0 %v1443_v55 }
 0x14d   :  { %1445 = vmatprep.subr.bf16.mxu0 %v1621_v0 }
 0x150   :  { %1447 = vmatpush3.bf16.msra.mxu0 %v1446_v58 }
 0x151   :  { %1448 = vmatprep.subr.bf16.mxu0 %v1621_v0 }
 0x154   :  { %1450 = vmatpush3.bf16.msra.mxu0 %v1449_v61 }
 0x155   :  { %1451 = vmatprep.subr.bf16.mxu0 %v1621_v0 }
 0x158   :  { %1453 = vmatpush3.bf16.msra.mxu0 %v1452_v2 }
 0x159   :  { %1454 = vmatprep.subr.bf16.mxu0 %v1621_v0 }
 0x15c   :  { %1456 = vmatpush3.bf16.msra.mxu0 %v1455_v5  ;;  %v657_v51 = vpop.f32.mrb[4].mxu1 }
 0x15d   :  { %1481 = vmatprep.subr.bf16.mxu0 %v1621_v0  ;;  %v1242_v12 = vpop.f32.mrb[5].mxu1  ;;  %v661_v31 = vmul.f32 %v657_v51, %v657_v51 }
 0x15f   :  { %1206 = vmatmul.mubr.f32.vlgmr.msra.gmra.mrb[2].mxu0 %v487_v8 }
 0x160   :  { %1483 = vmatpush3.bf16.msra.mxu0 %v1482_v9  ;;  %1275 = vmatprep.mubr.msk.f32.mxu0 %vm1622_vm0, %v1623_v1  ;;  %v585_v1 = vld [vmem:[#allocation5 + $0x3d0] sm:$0xff] }
 0x161   :  { %1484 = vmatprep.subr.bf16.mxu0 %v1621_v0  ;;  %v1497_v24 = vpack.c.bf16 %v586_v23, %v585_v1 }
 0x164   :  { %1486 = vmatpush3.bf16.msra.mxu0 %v1485_v13 }
 0x165   :  { %1487 = vmatprep.subr.bf16.mxu0 %v1621_v0 }
 0x168   :  { %1489 = vmatpush3.bf16.msra.mxu0 %v1488_v16 }
 0x169   :  { %1490 = vmatprep.subr.bf16.mxu0 %v1621_v0 }
 0x16c   :  { %1492 = vmatpush3.bf16.msra.mxu0 %v1491_v19 }
 0x16d   :  { %1493 = vmatprep.subr.bf16.mxu0 %v1621_v0 }
 0x170   :  { %1495 = vmatpush3.bf16.msra.mxu0 %v1494_v22 }
 0x171   :  { %1496 = vmatprep.subr.bf16.mxu0 %v1621_v0 }
 0x174   :  { %1498 = vmatpush3.bf16.msra.mxu0 %v1497_v24 }
 0x175   :  { %1499 = vmatprep.subr.bf16.mxu0 %v1621_v0 }
 0x178   :  { %1501 = vmatpush3.bf16.msra.mxu0 %v1500_v27 }
 0x179   :  { %1502 = vmatprep.subr.bf16.mxu0 %v1621_v0 }
 0x17c   :  { %1504 = vmatpush3.bf16.msra.mxu0 %v1503_v30 }
 0x17f   :  { %1276 = vmatmul.mubr.f32.vlgmr.msra.gmra.mrb[2].mxu0 %v661_v31 }
 0x252   :  { %v728_v44 = vpop.f32.mrb[2].mxu0 }
 0x253   :  { %v733_v45 = vmax.f32 %v728_v44, 1e-06  ;;  %v1277_v46 = vpop.f32.mrb[3].mxu0 }
 0x255   :  { %1543 = vlog2.f32 %v733_v45 }
 0x25f   :  { %v1544_v47 = vpop.eup %1543 }
 0x260   :  { %v735_v48 = vmul.f32 0.6931472, %v1544_v47 }
 0x262   :  { %1311 = vmatmul.mubr.f32.vlgmr.msra.gmra.mrb[6].mxu1 %v735_v48 }
 0x335   :  { %v823_v50 = vpop.f32.mrb[6].mxu1 }
 0x336   :  { %v824_v52 = vadd.f32 %v844_v49, %v823_v50  ;;  %v1312_v53 = vpop.f32.mrb[7].mxu1 }
 0x338   :  { %827 = vst [vmem:[#allocation7] sm:$0xff] %v824_v52 }
 0x339   :  { %1600 = shalt.err (!%p1597_p6)
}
 0x33a   :  { %s1601_s10 = scalar_lea.hbm %s1781_s2, 128 }
 0x33b   :  { %p1602_p7 = scmp.ne.s32.totalorder %s1781_s2, %s1601_s10  ;;  %p1605_p8 = scmp.lt.u32.totalorder %s1601_s10, %s1781_s2 }
 0x33d   :  { %p1607_p9 = pnand %p1605_p8, %p1602_p7 }
 0x33f   :  { %1610 = shalt.err (!%p1607_p9)
}
 0x340   :  { %837 = dma.vmem_to_hbm [thread:$0]  %s835_s6, 128, %s1781_s2, [#allocation4]  }
 0x341   :  { %1615 = dma.done.wait [#allocation4], 128  }
 0x342   :  { %1616 = vsyncadd [#allocation4], 4294967168 }
 0x343   :  { %841 = vsyncpa [#allocation3], 1 }
 0x344   :  { %842 = vsyncpa [#allocation6], 1 }
 0x345   :  { %843 = vsyncpa [#allocation4], 1 }

</bundles_post_ra>
